<compile_context>
chip_gen: v7x
topology: tpu7x:2x2x1
jax: 0.10.0
libtpu: 0.0.40
codegen_flags: <defaults>
</compile_context>

<pallas_src>
import math

import jax
import jax.numpy as jnp
from jax import lax
from jax.experimental import pallas as pl
from jax.experimental.pallas import tpu as pltpu

PRIOR_MEAN = 0.0
PRIOR_STD = 0.1
PRIOR_LOG_STD = math.log(PRIOR_STD)


def _fused_bayes_kernel(x_ref, wm_ref, wls_ref, epsw_ref, bm_ref, bls_ref,
                        epsb_ref, o_ref, kl_ref, w_sc, b_sc):
    # Grid axes: 0 = output-feature tile j (outer, parallel),
    #            1 = batch tile i          (inner, arbitrary / fastest).
    i = pl.program_id(1)

    # ---- once per weight tile: sample W, b and accumulate this tile's KL ---
    # The weight blocks are resident across the inner batch sweep, so the
    # EUP exp, the VPU sampling FMA and the KL reduction run grid_j times
    # instead of grid_i * grid_j times.
    @pl.when(i == 0)
    def _sample_and_kl():
        wm = wm_ref[...]
        wls = wls_ref[...]
        w_std = jnp.exp(wls)
        w_sc[...] = (wm + w_std * epsw_ref[...]).astype(w_sc.dtype)  # bf16 for MXU

        bm = bm_ref[...]
        bls = bls_ref[...]
        b_std = jnp.exp(bls)
        b_sc[...] = bm + b_std * epsb_ref[...]

        denom = 2.0 * (PRIOR_STD ** 2)
        kl_w = jnp.sum(PRIOR_LOG_STD - wls
                       + (w_std * w_std + (wm - PRIOR_MEAN) ** 2) / denom - 0.5)
        kl_b = jnp.sum(PRIOR_LOG_STD - bls
                       + (b_std * b_std + (bm - PRIOR_MEAN) ** 2) / denom - 0.5)
        # Per-j KL partial written into a lane-dense block; wrapper reads [:,0,0].
        kl_ref[...] = jnp.full(kl_ref.shape, kl_w + kl_b, jnp.float32)

    # ---- X @ W^T + b --------------------------------------------------------
    # Contract the LAST dim of both operands (NT matmul): the sampled (tn, K)
    # weight tile feeds the MXU directly without an XLU transpose.
    acc = lax.dot_general(x_ref[...].astype(jnp.bfloat16), w_sc[...],
                          dimension_numbers=(((1,), (1,)), ((), ())),
                          preferred_element_type=jnp.float32)
    o_ref[...] = (acc + b_sc[...]).astype(o_ref.dtype)


def _round_up(x, m):
    return ((x + m - 1) // m) * m


def _pick_tile(dim, target, align):
    """Largest divisor of `dim` that is <= target and a multiple of `align`;
    falls back to the full dim (always a legal BlockSpec size)."""
    if dim <= target:
        return dim
    t = (target // align) * align
    while t >= align:
        if dim % t == 0:
            return t
        t -= align
    return dim


def _pick_tiles(batch_p, k_p, out_p, vmem_budget=16 << 20):
    """Tile (batch x num_outputs); K stays untiled.
    Budget accounts for double-buffered blocks, the sampled-W scratch and the
    weight-sized live intermediates of the sampling step."""
    tm = _pick_tile(batch_p, 256, 8)
    tn = _pick_tile(out_p, 512, 128)

    def est(tm_, tn_):
        blocks = 2 * 4 * (tm_ * k_p + 3 * tn_ * k_p + tm_ * tn_
                          + 3 * tn_ + 8 * 128)          # double-buffered f32
        scratch = 2 * tn_ * k_p + 4 * tn_               # bf16 W + f32 b scratch
        live = 2 * 4 * tn_ * k_p                        # w_std + sampled w
        return blocks + scratch + live

    for _ in range(16):                                 # bounded shrink loop
        if est(tm, tn) <= vmem_budget:
            break
        if tn > 128:
            tn = _pick_tile(out_p, max(tn // 2, 128), 128)
        elif tm > 8:
            tm = _pick_tile(batch_p, max(tm // 2, 8), 8)
        else:
            break
    # TODO(synk): tile K as a third "arbitrary" grid axis for very large
    # num_inputs instead of shrinking tn/tm.
    return tm, tn


def _vmem_limit_bytes():
    """Generation-aware scoped-VMEM limit: raise the small defaults
    (v5e: 16 MiB, v6e/v7x: 32 MiB) while keeping headroom under the physical
    capacity (128 MiB on v5e/v6e, 64 MiB on v7x)."""
    try:
        cap = pltpu.get_tpu_info().vmem_capacity_bytes
        return int(min(cap * 3 // 4, 96 << 20))
    except Exception:
        return 48 << 20


def _draw_noise(key, num_out, num_in):
    kw, kb = jax.random.split(key)
    eps_w = jax.random.normal(kw, (num_out, num_in), jnp.float32)
    eps_b = jax.random.normal(kb, (num_out,), jnp.float32)
    return eps_w, eps_b


def bayesian_layer_forward(x, weight_mean, weight_log_std,
                           bias_mean, bias_log_std, key):
    """Returns (output, kl_loss) matching BayesianLayer.forward semantics."""
    batch, num_in = x.shape
    num_out = weight_mean.shape[0]

    eps_w, eps_b = _draw_noise(key, num_out, num_in)

    # Pad to lane/sublane-dense shapes. Padding with (prior_mean,
    # prior_log_std, eps=0, x=0) contributes exactly 0 to output and KL.
    b_p = _round_up(batch, 8)
    k_p = _round_up(num_in, 128)
    n_p = _round_up(num_out, 128)

    def pad2(a, rows, cols, fill):
        a = a.astype(jnp.float32)
        return jnp.pad(a, ((0, rows - a.shape[0]), (0, cols - a.shape[1])),
                       constant_values=fill)

    x_p = pad2(x, b_p, k_p, 0.0)
    wm_p = pad2(weight_mean, n_p, k_p, PRIOR_MEAN)
    wls_p = pad2(weight_log_std, n_p, k_p, PRIOR_LOG_STD)
    ew_p = pad2(eps_w, n_p, k_p, 0.0)
    bm_p = pad2(bias_mean.reshape(1, -1), 1, n_p, PRIOR_MEAN)
    bls_p = pad2(bias_log_std.reshape(1, -1), 1, n_p, PRIOR_LOG_STD)
    eb_p = pad2(eps_b.reshape(1, -1), 1, n_p, 0.0)

    tm, tn = _pick_tiles(b_p, k_p, n_p)
    n_i = b_p // tm
    n_j = n_p // tn
    grid = (n_j, n_i)   # batch innermost -> weight blocks stay resident

    in_specs = [
        pl.BlockSpec((tm, k_p), lambda j, i: (i, 0)),      # x
        pl.BlockSpec((tn, k_p), lambda j, i: (j, 0)),      # weight_mean
        pl.BlockSpec((tn, k_p), lambda j, i: (j, 0)),      # weight_log_std
        pl.BlockSpec((tn, k_p), lambda j, i: (j, 0)),      # eps_w
        pl.BlockSpec((1, tn), lambda j, i: (0, j)),        # bias_mean
        pl.BlockSpec((1, tn), lambda j, i: (0, j)),        # bias_log_std
        pl.BlockSpec((1, tn), lambda j, i: (0, j)),        # eps_b
    ]
    out_specs = [
        pl.BlockSpec((tm, tn), lambda j, i: (i, j)),       # output
        pl.BlockSpec((1, 8, 128), lambda j, i: (j, 0, 0)), # per-j KL partial
    ]
    out_shape = [
        jax.ShapeDtypeStruct((b_p, n_p), jnp.float32),
        jax.ShapeDtypeStruct((n_j, 8, 128), jnp.float32),
    ]
    scratch_shapes = [
        pltpu.VMEM((tn, k_p), jnp.bfloat16),               # sampled W tile
        pltpu.VMEM((1, tn), jnp.float32),                  # sampled bias tile
    ]

    cost = pl.CostEstimate(
        flops=2 * b_p * n_p * k_p,
        transcendentals=n_p * k_p + n_p,
        bytes_accessed=4 * (3 * n_p * k_p + 3 * n_p          # weights once
                            + n_j * b_p * k_p                # x once per j
                            + b_p * n_p + n_j * 8 * 128),    # outputs
    )

    out_pad, kl_parts = pl.pallas_call(
        _fused_bayes_kernel,
        grid=grid,
        in_specs=in_specs,
        out_specs=out_specs,
        out_shape=out_shape,
        scratch_shapes=scratch_shapes,
        compiler_params=pltpu.CompilerParams(
            # j (output tiles) is parallel -> both TensorCores on v7x.
            # i (batch tiles) is arbitrary: the sampled-W scratch and the
            # per-j KL partial carry state across the inner batch sweep.
            dimension_semantics=("parallel", "arbitrary"),
            vmem_limit_bytes=_vmem_limit_bytes(),
        ),
        cost_estimate=cost,
    )(x_p, wm_p, wls_p, ew_p, bm_p, bls_p, eb_p)

    out = out_pad[:batch, :num_out]
    kl_loss = jnp.sum(kl_parts[:, 0, 0])
    return out, kl_loss


if __name__ == "__main__":
    num_inputs, num_outputs, batch = 32, 16, 8

    key = jax.random.PRNGKey(0)
    k_wm, k_bm, k_x, k_eps = jax.random.split(key, 4)

    # Deterministic parameter init mirroring reset_parameters().
    stdv = 1.0 / math.sqrt(num_inputs)
    weight_mean = jax.random.uniform(
        k_wm, (num_outputs, num_inputs), jnp.float32, -stdv, stdv)
    weight_log_std = jnp.full((num_outputs, num_inputs), PRIOR_LOG_STD,
                              jnp.float32)
    bias_mean = jax.random.uniform(
        k_bm, (num_outputs,), jnp.float32, -stdv, stdv)
    bias_log_std = jnp.full((num_outputs,), PRIOR_LOG_STD, jnp.float32)

    x = jax.random.normal(k_x, (batch, num_inputs), jnp.float32)

    out, kl_loss = bayesian_layer_forward(
        x, weight_mean, weight_log_std, bias_mean, bias_log_std, k_eps)
    jax.block_until_ready((out, kl_loss))

    # Reference with the exact same noise draws (bf16 matmul inside the
    # kernel -> loose-ish tolerance; noise std ~0.57 so this still checks the
    # sampled-weight math, not just the mean map).
    eps_w_ref, eps_b_ref = _draw_noise(k_eps, num_outputs, num_inputs)
    w_ref = weight_mean + jnp.exp(weight_log_std) * eps_w_ref
    b_ref = bias_mean + jnp.exp(bias_log_std) * eps_b_ref
    out_ref = x @ w_ref.T + b_ref

    def kl_closed_form(m, ls):
        return jnp.sum(PRIOR_LOG_STD - ls
                       + (jnp.exp(ls) ** 2 + (m - PRIOR_MEAN) ** 2)
                       / (2.0 * PRIOR_STD ** 2) - 0.5)

    ref_kl = (kl_closed_form(weight_mean, weight_log_std)
              + kl_closed_form(bias_mean, bias_log_std))

    assert out.shape == (batch, num_outputs)
    assert bool(jnp.all(jnp.isfinite(out)))
    assert jnp.allclose(out, out_ref, atol=5e-2, rtol=5e-2), \
        float(jnp.max(jnp.abs(out - out_ref)))
    assert jnp.allclose(kl_loss, ref_kl, atol=5e-3, rtol=1e-3), \
        (float(kl_loss), float(ref_kl))

    print("KERNEL_OK")
</pallas_src>

<mosaic_0001>
module attributes {stable_mosaic.version = 11 : i64} {
  func.func @_fused_bayes_kernel(%arg0: i32, %arg1: i32, %arg2: memref<8x128xf32, #tpu.memory_space<vmem>>, %arg3: memref<128x128xf32, #tpu.memory_space<vmem>>, %arg4: memref<128x128xf32, #tpu.memory_space<vmem>>, %arg5: memref<128x128xf32, #tpu.memory_space<vmem>>, %arg6: memref<1x128xf32, #tpu.memory_space<vmem>>, %arg7: memref<1x128xf32, #tpu.memory_space<vmem>>, %arg8: memref<1x128xf32, #tpu.memory_space<vmem>>, %arg9: memref<8x128xf32, #tpu.memory_space<vmem>>, %arg10: memref<1x8x128xf32, #tpu.memory_space<vmem>>, %arg11: memref<128x128xbf16, #tpu.memory_space<vmem>>, %arg12: memref<1x128xf32, #tpu.memory_space<vmem>>) attributes {dimension_semantics = [#tpu.dimension_semantics<parallel>, #tpu.dimension_semantics<arbitrary>], iteration_bounds = array<i64: 1, 1>, scalar_prefetch = 0 : i64, scratch_operands = 2 : i64, tpu.core_type = #tpu.core_type<tc>, window_params = [{transform_indices = @transform_0, window_bounds = array<i64: 8, 128>}, {transform_indices = @transform_1, window_bounds = array<i64: 128, 128>}, {transform_indices = @transform_2, window_bounds = array<i64: 128, 128>}, {transform_indices = @transform_3, window_bounds = array<i64: 128, 128>}, {transform_indices = @transform_4, window_bounds = array<i64: 1, 128>}, {transform_indices = @transform_5, window_bounds = array<i64: 1, 128>}, {transform_indices = @transform_6, window_bounds = array<i64: 1, 128>}, {transform_indices = @transform_7, window_bounds = array<i64: 8, 128>}, {transform_indices = @transform_8, window_bounds = array<i64: 1, 8, 128>}]} {
    %c0_i32 = arith.constant 0 : i32
    %0 = arith.cmpi eq, %arg1, %c0_i32 : i32
    %1 = arith.extui %0 : i1 to i32
    %c0_i32_0 = arith.constant 0 : i32
    %2 = arith.cmpi ne, %1, %c0_i32_0 : i32
    scf.if %2 {
      %c0_8 = arith.constant 0 : index
      %c0_9 = arith.constant 0 : index
      %11 = vector.load %arg3[%c0_8, %c0_9] : memref<128x128xf32, #tpu.memory_space<vmem>>, vector<128x128xf32>
      %c0_10 = arith.constant 0 : index
      %c0_11 = arith.constant 0 : index
      %12 = vector.load %arg4[%c0_10, %c0_11] : memref<128x128xf32, #tpu.memory_space<vmem>>, vector<128x128xf32>
      %13 = math.exp %12 : vector<128x128xf32>
      %c0_12 = arith.constant 0 : index
      %c0_13 = arith.constant 0 : index
      %14 = vector.load %arg5[%c0_12, %c0_13] : memref<128x128xf32, #tpu.memory_space<vmem>>, vector<128x128xf32>
      %15 = arith.mulf %13, %14 : vector<128x128xf32>
      %16 = arith.addf %11, %15 : vector<128x128xf32>
      %17 = arith.truncf %16 : vector<128x128xf32> to vector<128x128xbf16>
      %c0_14 = arith.constant 0 : index
      %c0_15 = arith.constant 0 : index
      %18 = vector.load %arg11[%c0_14, %c0_15] : memref<128x128xbf16, #tpu.memory_space<vmem>>, vector<128x128xbf16>
      tpu.vector_store %arg11[%c0_14, %c0_15], %17 {strides = array<i32>} : memref<128x128xbf16, #tpu.memory_space<vmem>>, vector<128x128xbf16>,
      %c0_16 = arith.constant 0 : index
      %c0_17 = arith.constant 0 : index
      %19 = vector.load %arg6[%c0_16, %c0_17] : memref<1x128xf32, #tpu.memory_space<vmem>>, vector<1x128xf32>
      %c0_18 = arith.constant 0 : index
      %c0_19 = arith.constant 0 : index
      %20 = vector.load %arg7[%c0_18, %c0_19] : memref<1x128xf32, #tpu.memory_space<vmem>>, vector<1x128xf32>
      %21 = math.exp %20 : vector<1x128xf32>
      %c0_20 = arith.constant 0 : index
      %c0_21 = arith.constant 0 : index
      %22 = vector.load %arg8[%c0_20, %c0_21] : memref<1x128xf32, #tpu.memory_space<vmem>>, vector<1x128xf32>
      %23 = arith.mulf %21, %22 : vector<1x128xf32>
      %24 = arith.addf %19, %23 : vector<1x128xf32>
      %c0_22 = arith.constant 0 : index
      %c0_23 = arith.constant 0 : index
      %25 = vector.load %arg12[%c0_22, %c0_23] : memref<1x128xf32, #tpu.memory_space<vmem>>, vector<1x128xf32>
      tpu.vector_store %arg12[%c0_22, %c0_23], %24 {strides = array<i32>} : memref<1x128xf32, #tpu.memory_space<vmem>>, vector<1x128xf32>,
      %cst_24 = arith.constant -2.30258512 : f32
      %26 = vector.broadcast %cst_24 : f32 to vector<128x128xf32>
      %27 = arith.subf %26, %12 : vector<128x128xf32>
      %28 = arith.mulf %13, %13 : vector<128x128xf32>
      %cst_25 = arith.constant 0.000000e+00 : f32
      %29 = vector.broadcast %cst_25 : f32 to vector<128x128xf32>
      %30 = arith.subf %11, %29 : vector<128x128xf32>
      %31 = arith.mulf %30, %30 : vector<128x128xf32>
      %32 = arith.addf %28, %31 : vector<128x128xf32>
      %cst_26 = arith.constant 2.000000e-02 : f32
      %33 = vector.broadcast %cst_26 : f32 to vector<128x128xf32>
      %34 = arith.divf %32, %33 : vector<128x128xf32>
      %35 = arith.addf %27, %34 : vector<128x128xf32>
      %cst_27 = arith.constant 5.000000e-01 : f32
      %36 = vector.broadcast %cst_27 : f32 to vector<128x128xf32>
      %37 = arith.subf %35, %36 : vector<128x128xf32>
      %38 = vector.shape_cast %37 : vector<128x128xf32> to vector<1x128x128xf32>
      %cst_28 = arith.constant dense<0.000000e+00> : vector<1xf32>
      %39 = vector.multi_reduction <add>, %38, %cst_28 [1, 2] : vector<1x128x128xf32> to vector<1xf32>
      %40 = vector.shape_cast %39 : vector<1xf32> to vector<1x1x1xf32>
      %41 = vector.extract %40[0, 0, 0] : f32 from vector<1x1x1xf32>
      %cst_29 = arith.constant -2.30258512 : f32
      %42 = vector.broadcast %cst_29 : f32 to vector<1x128xf32>
      %43 = arith.subf %42, %20 : vector<1x128xf32>
      %44 = arith.mulf %21, %21 : vector<1x128xf32>
      %cst_30 = arith.constant 0.000000e+00 : f32
      %45 = vector.broadcast %cst_30 : f32 to vector<1x128xf32>
      %46 = arith.subf %19, %45 : vector<1x128xf32>
      %47 = arith.mulf %46, %46 : vector<1x128xf32>
      %48 = arith.addf %44, %47 : vector<1x128xf32>
      %cst_31 = arith.constant 2.000000e-02 : f32
      %49 = vector.broadcast %cst_31 : f32 to vector<1x128xf32>
      %50 = arith.divf %48, %49 : vector<1x128xf32>
      %51 = arith.addf %43, %50 : vector<1x128xf32>
      %cst_32 = arith.constant 5.000000e-01 : f32
      %52 = vector.broadcast %cst_32 : f32 to vector<1x128xf32>
      %53 = arith.subf %51, %52 : vector<1x128xf32>
      %54 = vector.shape_cast %53 : vector<1x128xf32> to vector<1x1x128xf32>
      %cst_33 = arith.constant dense<0.000000e+00> : vector<1xf32>
      %55 = vector.multi_reduction <add>, %54, %cst_33 [1, 2] : vector<1x1x128xf32> to vector<1xf32>
      %56 = vector.shape_cast %55 : vector<1xf32> to vector<1x1x1xf32>
      %57 = vector.extract %56[0, 0, 0] : f32 from vector<1x1x1xf32>
      %58 = arith.addf %41, %57 : f32
      %59 = vector.broadcast %58 : f32 to vector<1x8x128xf32>
      %c0_34 = arith.constant 0 : index
      %c0_35 = arith.constant 0 : index
      %c0_36 = arith.constant 0 : index
      %60 = vector.load %arg10[%c0_34, %c0_35, %c0_36] : memref<1x8x128xf32, #tpu.memory_space<vmem>>, vector<1x8x128xf32>
      tpu.vector_store %arg10[%c0_34, %c0_35, %c0_36], %59 {strides = array<i32>} : memref<1x8x128xf32, #tpu.memory_space<vmem>>, vector<1x8x128xf32>,
    } else {
    }
    %c0 = arith.constant 0 : index
    %c0_1 = arith.constant 0 : index
    %3 = vector.load %arg2[%c0, %c0_1] : memref<8x128xf32, #tpu.memory_space<vmem>>, vector<8x128xf32>
    %4 = arith.truncf %3 : vector<8x128xf32> to vector<8x128xbf16>
    %c0_2 = arith.constant 0 : index
    %c0_3 = arith.constant 0 : index
    %5 = vector.load %arg11[%c0_2, %c0_3] : memref<128x128xbf16, #tpu.memory_space<vmem>>, vector<128x128xbf16>
    %cst = arith.constant dense<0.000000e+00> : vector<8x128xf32>
    %6 = tpu.matmul %4, %5, %cst {dimension_numbers = #tpu.dot_dimension_numbers<[1], [1], [0], [0], [0, 0, 1, 0], [], []>} : vector<8x128xbf16>, vector<128x128xbf16>, vector<8x128xf32> -> vector<8x128xf32>
    %c0_4 = arith.constant 0 : index
    %c0_5 = arith.constant 0 : index
    %7 = vector.load %arg12[%c0_4, %c0_5] : memref<1x128xf32, #tpu.memory_space<vmem>>, vector<1x128xf32>
    %8 = vector.broadcast %7 : vector<1x128xf32> to vector<8x128xf32>
    %9 = arith.addf %6, %8 : vector<8x128xf32>
    %c0_6 = arith.constant 0 : index
    %c0_7 = arith.constant 0 : index
    %10 = vector.load %arg9[%c0_6, %c0_7] : memref<8x128xf32, #tpu.memory_space<vmem>>, vector<8x128xf32>
    tpu.vector_store %arg9[%c0_6, %c0_7], %9 {strides = array<i32>} : memref<8x128xf32, #tpu.memory_space<vmem>>, vector<8x128xf32>,
    return
  }
  func.func @transform_0(%arg0: i32, %arg1: i32) -> (i32, i32) {
    %c0_i32 = arith.constant 0 : i32
    %c0_i32_0 = arith.constant 0 : i32
    return %arg1, %c0_i32 : i32, i32
  }
  func.func @transform_1(%arg0: i32, %arg1: i32) -> (i32, i32) {
    %c0_i32 = arith.constant 0 : i32
    %c0_i32_0 = arith.constant 0 : i32
    return %arg0, %c0_i32 : i32, i32
  }
  func.func @transform_2(%arg0: i32, %arg1: i32) -> (i32, i32) {
    %c0_i32 = arith.constant 0 : i32
    %c0_i32_0 = arith.constant 0 : i32
    return %arg0, %c0_i32 : i32, i32
  }
  func.func @transform_3(%arg0: i32, %arg1: i32) -> (i32, i32) {
    %c0_i32 = arith.constant 0 : i32
    %c0_i32_0 = arith.constant 0 : i32
    return %arg0, %c0_i32 : i32, i32
  }
  func.func @transform_4(%arg0: i32, %arg1: i32) -> (i32, i32) {
    %c0_i32 = arith.constant 0 : i32
    %c0_i32_0 = arith.constant 0 : i32
    return %c0_i32, %arg0 : i32, i32
  }
  func.func @transform_5(%arg0: i32, %arg1: i32) -> (i32, i32) {
    %c0_i32 = arith.constant 0 : i32
    %c0_i32_0 = arith.constant 0 : i32
    return %c0_i32, %arg0 : i32, i32
  }
  func.func @transform_6(%arg0: i32, %arg1: i32) -> (i32, i32) {
    %c0_i32 = arith.constant 0 : i32
    %c0_i32_0 = arith.constant 0 : i32
    return %c0_i32, %arg0 : i32, i32
  }
  func.func @transform_7(%arg0: i32, %arg1: i32) -> (i32, i32) {
    %c0_i32 = arith.constant 0 : i32
    return %arg1, %arg0 : i32, i32
  }
  func.func @transform_8(%arg0: i32, %arg1: i32) -> (i32, i32, i32) {
    %c0_i32 = arith.constant 0 : i32
    %c0_i32_0 = arith.constant 0 : i32
    %c0_i32_1 = arith.constant 0 : i32
    return %arg0, %c0_i32, %c0_i32_0 : i32, i32, i32
  }
}

</mosaic_0001>

<bundles_post_ra>
// kernel: tpu_custom_call.1
= control target key start
LH: loop header
LB: loop body
LE: loop exit
PB: predicated region body
PF: predicated region fallthrough
CT: control target
= control target key end

     0   :  { %14 = vsyncpa [#allocation5], 0  ;;  %s1014_s0 = inlined_call_operand.hbm [shape: f32[8,128], index: 0, kind: input, shape index: {}]   ;;  %s1015_s1 = inlined_call_operand.hbm [shape: f32[128,128], index: 1, kind: input, shape index: {}]   ;;  %s1016_s2 = inlined_call_operand.hbm [shape: f32[128,128], index: 2, kind: input, shape index: {}]   ;;  %s1017_s3 = inlined_call_operand.hbm [shape: f32[128,128], index: 3, kind: input, shape index: {}]   ;;  %s1018_s4 = inlined_call_operand.vmem [shape: f32[1,128], index: 4, kind: input, shape index: {}]   ;;  %s1019_s5 = inlined_call_operand.vmem [shape: f32[1,128], index: 5, kind: input, shape index: {}]   ;;  %s1020_s6 = inlined_call_operand.vmem [shape: f32[1,128], index: 6, kind: input, shape index: {}]   ;;  %s1021_s7 = inlined_call_operand.hbm [shape: f32[8,128], index: 7, kind: output, shape index: {0}]   ;;  %s1022_s8 = inlined_call_operand.hbm [shape: f32[1,8,128], index: 8, kind: output, shape index: {1}]  }
   0x1   :  { %15 = vsyncpa [#allocation8], 0 }
   0x2   :  { %16 = vsyncpa [#allocation11], 0 }
   0x3   :  { %17 = vsyncpa [#allocation6], 0 }
   0x4   :  { %18 = vsyncpa [#allocation14], 0  ;;  %s708_s27 = smov [#allocation7]   ;;  %s566_s9 = scalar_lea.hbm %s1015_s1, 2048 }
   0x5   :  { %s34_s28 = sshll.u32 %s708_s27, 4  ;;  %p567_p0 = scmp.ne.s32.totalorder %s1015_s1, %s566_s9  ;;  %s35_s28 = int_to_ptr.vmem [resolvable:$true] %s34_s28 }
   0x6   :  { %p570_p1 = scmp.lt.u32.totalorder %s566_s9, %s1015_s1 }
   0x8   :  { %p572_p2 = pnand %p570_p1, %p567_p0 }
   0xa   :  { %575 = shalt.err (!%p572_p2)
}
   0xb   :  { %s576_s14 = scalar_lea.vmem %s35_s28, 2048  ;;  %p581_p4 = scmp.lt.s32.totalorder %s35_s28, %s35_s28 }
   0xc   :  { %p577_p3 = scmp.ne.s32.totalorder %s35_s28, %s576_s14  ;;  %p582_p5 = scmp.lt.s32.totalorder %s576_s14, %s576_s14 }
   0xe   :  { %p583_p6 = por %p582_p5, %p581_p4 }
  0x10   :  { %p584_p7 = pnand %p583_p6, %p577_p3 }
  0x12   :  { %587 = shalt.err (!%p584_p7)
}
  0x13   :  { %s709_s15 = smov 128   ;;  %s710_s16 = smov 8  }
  0x14   :  { %40 = dma.hbm_to_vmem [thread:$0]  %s1015_s1, 2048, %s35_s28, [#allocation8], %s709_s15, %s709_s15, %s710_s16  }
  0x15   :  { %s711_s19 = smov [#allocation4]   ;;  %s712_s21 = smov [#allocation9]  }
  0x16   :  { %s25_s20 = sshll.u32 %s711_s19, 4  ;;  %s46_s22 = sshll.u32 %s712_s21, 4  ;;  %s26_s20 = int_to_ptr.vmem [resolvable:$true] %s25_s20  ;;  %s47_s22 = int_to_ptr.vmem [resolvable:$true] %s46_s22 }
  0x17   :  { %s588_s25 = scalar_lea.hbm %s1014_s0, 128 }
  0x18   :  { %p589_p8 = scmp.ne.s32.totalorder %s1014_s0, %s588_s25  ;;  %p592_p9 = scmp.lt.u32.totalorder %s588_s25, %s1014_s0 }
  0x1a   :  { %p594_p10 = pnand %p592_p9, %p589_p8 }
  0x1c   :  { %597 = shalt.err (!%p594_p10)
}
  0x1d   :  { %s598_s1 = scalar_lea.vmem %s26_s20, 128  ;;  %p603_p12 = scmp.lt.s32.totalorder %s26_s20, %s26_s20 }
  0x1e   :  { %p599_p11 = scmp.ne.s32.totalorder %s26_s20, %s598_s1  ;;  %p604_p13 = scmp.lt.s32.totalorder %s598_s1, %s598_s1 }
  0x20   :  { %p605_p0 = por %p604_p13, %p603_p12 }
  0x22   :  { %p606_p1 = pnand %p605_p0, %p599_p11 }
  0x24   :  { %609 = shalt.err (!%p606_p1)
}
  0x25   :  { %28 = dma.hbm_to_vmem [thread:$0]  %s1014_s0, 128, %s26_s20, [#allocation5]  }
  0x26   :  { %s610_s12 = scalar_lea.hbm %s1016_s2, 2048 }
  0x27   :  { %p611_p2 = scmp.ne.s32.totalorder %s1016_s2, %s610_s12  ;;  %p614_p3 = scmp.lt.u32.totalorder %s610_s12, %s1016_s2 }
  0x29   :  { %p616_p4 = pnand %p614_p3, %p611_p2 }
  0x2b   :  { %619 = shalt.err (!%p616_p4)
}
  0x2c   :  { %s620_s19 = scalar_lea.vmem %s47_s22, 2048  ;;  %p625_p6 = scmp.lt.s32.totalorder %s47_s22, %s47_s22 }
  0x2d   :  { %p621_p5 = scmp.ne.s32.totalorder %s47_s22, %s620_s19  ;;  %p626_p7 = scmp.lt.s32.totalorder %s620_s19, %s620_s19 }
  0x2f   :  { %p627_p8 = por %p626_p7, %p625_p6 }
  0x31   :  { %p628_p9 = pnand %p627_p8, %p621_p5 }
  0x33   :  { %631 = shalt.err (!%p628_p9)
}
  0x34   :  { %52 = dma.hbm_to_vmem [thread:$0]  %s1016_s2, 2048, %s47_s22, [#allocation8], %s709_s15, %s709_s15, %s710_s16  }
  0x35   :  { %s713_s21 = smov [#allocation10]   ;;  %s632_s26 = scalar_lea.hbm %s1017_s3, 2048 }
  0x36   :  { %s58_s23 = sshll.u32 %s713_s21, 4  ;;  %p633_p10 = scmp.ne.s32.totalorder %s1017_s3, %s632_s26  ;;  %s59_s23 = int_to_ptr.vmem [resolvable:$true] %s58_s23 }
  0x37   :  { %p636_p11 = scmp.lt.u32.totalorder %s632_s26, %s1017_s3 }
  0x39   :  { %p638_p12 = pnand %p636_p11, %p633_p10 }
  0x3b   :  { %641 = shalt.err (!%p638_p12)
}
  0x3c   :  { %s642_s28 = scalar_lea.vmem %s59_s23, 2048  ;;  %p647_p0 = scmp.lt.s32.totalorder %s59_s23, %s59_s23 }
  0x3d   :  { %p643_p13 = scmp.ne.s32.totalorder %s59_s23, %s642_s28  ;;  %p648_p1 = scmp.lt.s32.totalorder %s642_s28, %s642_s28 }
  0x3f   :  { %p649_p2 = por %p648_p1, %p647_p0 }
  0x41   :  { %p650_p3 = pnand %p649_p2, %p643_p13 }
  0x43   :  { %653 = shalt.err (!%p650_p3)
}
  0x44   :  { %64 = dma.hbm_to_vmem [thread:$0]  %s1017_s3, 2048, %s59_s23, [#allocation11], %s709_s15, %s709_s15, %s710_s16  }
  0x45   :  { %698 = dma.done.wait [#allocation5], 128  }
  0x46   :  { %699 = vsyncadd [#allocation5], 4294967168 }
  0x47   :  { %700 = dma.done.wait [#allocation8], 4096  }
  0x48   :  { %701 = vsyncadd [#allocation8], 4294963200 }
  0x49   :  { %702 = dma.done.wait [#allocation11], 2048  }
  0x4a   :  { %703 = vsyncadd [#allocation11], 4294965248  ;;  %v714_v0 = vmov 0.0   ;;  %vm715_vm0 = vmmov 0   ;;  %v822_v1 = vld [vmem:[#allocation9] sm:$0xff]  ;;  %v824_v2 = vld [vmem:[#allocation9 + $0x8] sm:$0xff] }
  0x4b   :  { %498 = vmatprep.subr.bf16.mxu0 %v714_v0  ;;  %514 = vmatprep.mubr.msk.bf16.mxu0 %vm715_vm0, %v714_v0  ;;  %v120_v3 = vmul.f32 1.442695, %v822_v1  ;;  %v122_v4 = vmul.f32 1.442695, %v824_v2  ;;  %v828_v5 = vld [vmem:[#allocation9 + $0x10] sm:$0xff]  ;;  %v830_v6 = vld [vmem:[#allocation9 + $0x18] sm:$0xff] }
  0x4c   :  { %v124_v7 = vmul.f32 1.442695, %v828_v5  ;;  %v126_v8 = vmul.f32 1.442695, %v830_v6  ;;  %v834_v9 = vld [vmem:[#allocation9 + $0x20] sm:$0xff]  ;;  %v836_v10 = vld [vmem:[#allocation9 + $0x28] sm:$0xff] }
  0x4d   :  { %532 = vpow2.f32 %v120_v3  ;;  %v128_v11 = vmul.f32 1.442695, %v834_v9  ;;  %v88_v12 = vld [vmem:[#allocation7] sm:$0xff]  ;;  %v130_v13 = vmul.f32 1.442695, %v836_v10  ;;  %v89_v14 = vld [vmem:[#allocation7 + $0x8] sm:$0xff] }
  0x4e   :  { %534 = vpow2.f32 %v122_v4  ;;  %v152_v15 = vld [vmem:[#allocation10] sm:$0xff]  ;;  %v224_v16 = vsub.f32 -2.3025851, %v822_v1  ;;  %v841_v17 = vld [vmem:[#allocation9 + $0x30] sm:$0xff]  ;;  %v153_v18 = vld [vmem:[#allocation10 + $0x8] sm:$0xff]  ;;  %v256_v20 = vmul.f32 %v88_v12, %v88_v12  ;;  %v257_v27 = vmul.f32 %v89_v14, %v89_v14 }
  0x4f   :  { %536 = vpow2.f32 %v124_v7  ;;  %v225_v19 = vsub.f32 -2.3025851, %v824_v2  ;;  %v90_v21 = vld [vmem:[#allocation7 + $0x10] sm:$0xff]  ;;  %v91_v22 = vld [vmem:[#allocation7 + $0x18] sm:$0xff]  ;;  %v226_v24 = vsub.f32 -2.3025851, %v828_v5 }
  0x50   :  { %538 = vpow2.f32 %v126_v8  ;;  %v844_v23 = vld [vmem:[#allocation9 + $0x38] sm:$0xff]  ;;  %v227_v25 = vsub.f32 -2.3025851, %v830_v6  ;;  %v132_v26 = vmul.f32 1.442695, %v841_v17  ;;  %v258_v28 = vmul.f32 %v90_v21, %v90_v21  ;;  %v849_v30 = vld [vmem:[#allocation7 + $0x20] sm:$0xff] }
  0x51   :  { %540 = vpow2.f32 %v128_v11  ;;  %v259_v29 = vmul.f32 %v91_v22, %v91_v22  ;;  %v851_v31 = vld [vmem:[#allocation7 + $0x28] sm:$0xff]  ;;  %v134_v32 = vmul.f32 1.442695, %v844_v23  ;;  %v854_v33 = vld [vmem:[#allocation9 + $0x40] sm:$0xff]  ;;  %v228_v35 = vsub.f32 -2.3025851, %v834_v9 }
  0x52   :  { %542 = vpow2.f32 %v130_v13  ;;  %v229_v36 = vsub.f32 -2.3025851, %v836_v10  ;;  %v260_v37 = vmul.f32 %v849_v30, %v849_v30  ;;  %v862_v38 = vmul.f32 %v851_v31, %v851_v31  ;;  %v864_v39 = vld [vmem:[#allocation7 + $0x30] sm:$0xff]  ;;  %v866_v40 = vld [vmem:[#allocation9 + $0x48] sm:$0xff]  ;;  %v155_v49 = vld [vmem:[#allocation10 + $0x18] sm:$0xff] }
  0x53   :  { %v154_v44 = vld [vmem:[#allocation10 + $0x10] sm:$0xff]  ;;  %v870_v45 = vmul.f32 %v864_v39, %v864_v39  ;;  %v136_v46 = vmul.f32 1.442695, %v854_v33  ;;  %544 = vpow2.f32 %v132_v26  ;;  %v138_v50 = vmul.f32 1.442695, %v866_v40 }
  0x54   :  { %v874_v51 = vld [vmem:[#allocation9 + $0x50] sm:$0xff]  ;;  %546 = vpow2.f32 %v134_v32  ;;  %vm368_vm1 = vcmask 1040384  }
  0x55   :  { %v140_v55 = vmul.f32 1.442695, %v874_v51  ;;  %548 = vpow2.f32 %v136_v46 }
  0x56   :  { %550 = vpow2.f32 %v138_v50  ;;  %v889_v50 = vld [vmem:[#allocation7 + $0x40] sm:$0xff] }
  0x57   :  { %v533_v34 = vpop.eup %532  ;;  %552 = vpow2.f32 %v140_v55  ;;  %v264_v6 = vmul.f32 %v889_v50, %v889_v50 }
  0x58   :  { %v535_v41 = vpop.eup %534  ;;  %v168_v42 = vmul.f32 %v533_v34, %v152_v15  ;;  %v240_v43 = vmul.f32 %v533_v34, %v533_v34  ;;  %v230_v34 = vsub.f32 -2.3025851, %v841_v17 }
  0x59   :  { %v169_v47 = vmul.f32 %v535_v41, %v153_v18  ;;  %v241_v48 = vmul.f32 %v535_v41, %v535_v41  ;;  %v537_v52 = vpop.eup %536  ;;  %v156_v18 = vld [vmem:[#allocation10 + $0x20] sm:$0xff] }
  0x5a   :  { %v184_v53 = vadd.f32 %v168_v42, %v88_v12  ;;  %v272_v54 = vadd.f32 %v256_v20, %v240_v43  ;;  %v539_v56 = vpop.eup %538  ;;  %v170_v59 = vmul.f32 %v537_v52, %v154_v44  ;;  %v242_v60 = vmul.f32 %v537_v52, %v537_v52  ;;  %v157_v20 = vld [vmem:[#allocation10 + $0x28] sm:$0xff] }
  0x5b   :  { %v185_v57 = vadd.f32 %v169_v47, %v89_v14  ;;  %v273_v58 = vadd.f32 %v257_v27, %v241_v48  ;;  %v171_v62 = vmul.f32 %v539_v56, %v155_v49  ;;  %v243_v63 = vmul.f32 %v539_v56, %v539_v56  ;;  %v541_v4 = vpop.eup %540  ;;  %v877_v27 = vld [vmem:[#allocation7 + $0x38] sm:$0xff]  ;;  %v891_v52 = vld [vmem:[#allocation7 + $0x48] sm:$0xff] }
  0x5c   :  { %v289_v61 = vmul.f32 50.0, %v272_v54  ;;  %v274_v3 = vadd.f32 %v258_v28, %v242_v60  ;;  %v186_v8 = vadd.f32 %v170_v59, %v90_v21  ;;  %v543_v12 = vpop.eup %542  ;;  %v244_v26 = vmul.f32 %v541_v4, %v541_v4  ;;  %v158_v54 = vld [vmem:[#allocation10 + $0x30] sm:$0xff] }
  0x5d   :  { %v200_v1 = vpack.c.bf16 %v185_v57, %v184_v53  ;;  %v290_v2 = vmul.f32 50.0, %v273_v58  ;;  %v275_v11 = vadd.f32 %v259_v29, %v243_v63  ;;  %v187_v14 = vadd.f32 %v171_v62, %v91_v22  ;;  %v545_v46 = vpop.eup %544 }
  0x5e   :  { %v305_v7 = vadd.f32 %v289_v61, %v224_v16  ;;  %v291_v15 = vmul.f32 50.0, %v274_v3  ;;  %v263_v16 = vmul.f32 %v877_v27, %v877_v27  ;;  %v245_v22 = vmul.f32 %v543_v12, %v543_v12  ;;  %v547_v5 = vpop.eup %546 }
  0x5f   :  { %v306_v13 = vadd.f32 %v290_v2, %v225_v19  ;;  %499 = vmatpush3.bf16.xpose.msra.mxu0 %v200_v1  ;;  %v292_v28 = vmul.f32 50.0, %v275_v11  ;;  %v231_v29 = vsub.f32 -2.3025851, %v844_v23  ;;  %v172_v42 = vmul.f32 %v541_v4, %v156_v18  ;;  %v897_v57 = vpop.eup %548  ;;  %v159_v1 = vld [vmem:[#allocation10 + $0x38] sm:$0xff] }
  0x60   :  { %v471_v32 = vadd.f32 -0.5, %v305_v7  ;;  %500 = vmatprep.subr.bf16.mxu0 %v714_v0  ;;  %v307_v19 = vadd.f32 %v291_v15, %v226_v24  ;;  %v173_v43 = vmul.f32 %v543_v12, %v157_v20  ;;  %v276_v44 = vadd.f32 %v260_v37, %v244_v26  ;;  %v904_v61 = vpop.eup %550  ;;  %v909_v4 = vld [vmem:[#allocation9 + $0x58] sm:$0xff]  ;;  %v920_v26 = vld [vmem:[#allocation7 + $0x50] sm:$0xff] }
  0x61   :  { %v472_v21 = vadd.f32 -0.5, %v306_v13  ;;  %v308_v41 = vadd.f32 %v292_v28, %v227_v25  ;;  %v201_v48 = vpack.c.bf16 %v187_v14, %v186_v8  ;;  %v277_v49 = vadd.f32 %v862_v38, %v245_v22 }
  0x62   :  { %v473_v17 = vadd.f32 -0.5, %v307_v19  ;;  %v293_v53 = vmul.f32 50.0, %v276_v44  ;;  %v265_v23 = vmul.f32 %v891_v52, %v891_v52  ;;  %v246_v55 = vmul.f32 %v545_v46, %v545_v46 }
  0x63   :  { %v337_v47 = vadd.f32 %v472_v21, %v471_v32  ;;  %v474_v24 = vadd.f32 -0.5, %v308_v41  ;;  %v294_v37 = vmul.f32 50.0, %v277_v49  ;;  %v247_v56 = vmul.f32 %v547_v5, %v547_v5  ;;  %v926_v21 = vld [vmem:[#allocation9 + $0x68] sm:$0xff]  ;;  %v160_v49 = vld [vmem:[#allocation10 + $0x40] sm:$0xff] }
  0x64   :  { %v188_v38 = vadd.f32 %v172_v42, %v849_v30  ;;  %v189_v58 = vadd.f32 %v173_v43, %v851_v31  ;;  %v309_v59 = vadd.f32 %v293_v53, %v228_v35  ;;  %v232_v60 = vsub.f32 -2.3025851, %v854_v33  ;;  %v911_v30 = vpop.eup %552  ;;  %v931_v43 = vld [vmem:[#allocation9 + $0x70] sm:$0xff] }
  0x65   :  { %v338_v25 = vadd.f32 %v473_v17, %v337_v47  ;;  %v310_v63 = vadd.f32 %v294_v37, %v229_v36  ;;  %v278_v2 = vadd.f32 %v870_v45, %v246_v55  ;;  %v279_v3 = vadd.f32 %v263_v16, %v247_v56  ;;  %v936_v17 = vld [vmem:[#allocation9 + $0x78] sm:$0xff] }
  0x66   :  { %v475_v9 = vadd.f32 -0.5, %v309_v59  ;;  %v174_v31 = vmul.f32 %v545_v46, %v158_v54  ;;  %v233_v33 = vsub.f32 -2.3025851, %v866_v40  ;;  %v248_v35 = vmul.f32 %v897_v57, %v897_v57  ;;  %v922_v40 = vld [vmem:[#allocation9 + $0x60] sm:$0xff] }
  0x67   :  { %v339_v62 = vadd.f32 %v474_v24, %v338_v25  ;;  %501 = vmatpush3.bf16.xpose.msra.mxu0 %v201_v48  ;;  %v476_v7 = vadd.f32 -0.5, %v310_v63  ;;  %v295_v10 = vmul.f32 50.0, %v278_v2  ;;  %v296_v36 = vmul.f32 50.0, %v279_v3  ;;  %v99_v25 = vld [vmem:[#allocation7 + $0x58] sm:$0xff]  ;;  %v949_v63 = vld [vmem:[#allocation7 + $0x60] sm:$0xff] }
  0x68   :  { %502 = vmatprep.subr.bf16.mxu0 %v714_v0  ;;  %v249_v45 = vmul.f32 %v904_v61, %v904_v61  ;;  %v175_v11 = vmul.f32 %v547_v5, %v159_v1  ;;  %v280_v12 = vadd.f32 %v264_v6, %v248_v35  ;;  %v142_v13 = vmul.f32 1.442695, %v909_v4  ;;  %v161_v5 = vld [vmem:[#allocation10 + $0x48] sm:$0xff] }
  0x69   :  { %v340_v8 = vadd.f32 %v475_v9, %v339_v62  ;;  %v202_v14 = vpack.c.bf16 %v189_v58, %v188_v38  ;;  %v311_v15 = vadd.f32 %v295_v10, %v230_v34  ;;  %v312_v18 = vadd.f32 %v296_v36, %v231_v29  ;;  %v162_v62 = vld [vmem:[#allocation10 + $0x50] sm:$0xff] }
  0x6a   :  { %v281_v20 = vadd.f32 %v265_v23, %v249_v45  ;;  %v297_v28 = vmul.f32 50.0, %v280_v12  ;;  %554 = vpow2.f32 %v142_v13  ;;  %v250_v16 = vmul.f32 %v911_v30, %v911_v30  ;;  %v960_v36 = vld [vmem:[#allocation7 + $0x70] sm:$0xff]  ;;  %v965_v13 = vld [vmem:[#allocation7 + $0x78] sm:$0xff] }
  0x6b   :  { %v341_v32 = vadd.f32 %v476_v7, %v340_v8  ;;  %v477_v19 = vadd.f32 -0.5, %v311_v15  ;;  %v478_v22 = vadd.f32 -0.5, %v312_v18  ;;  %v266_v34 = vmul.f32 %v920_v26, %v920_v26 }
  0x6c   :  { %v298_v41 = vmul.f32 50.0, %v281_v20  ;;  %v313_v42 = vadd.f32 %v297_v28, %v232_v60  ;;  %v144_v29 = vmul.f32 1.442695, %v922_v40  ;;  %v190_v44 = vadd.f32 %v174_v31, %v864_v39 }
  0x6d   :  { %v191_v46 = vadd.f32 %v175_v11, %v877_v27  ;;  %v342_v47 = vadd.f32 %v477_v19, %v341_v32  ;;  %v146_v48 = vmul.f32 1.442695, %v926_v21  ;;  %v282_v53 = vadd.f32 %v266_v34, %v250_v16  ;;  %v943_v27 = vld [vmem:[%s1019_s5] sm:$0x1] }
  0x6e   :  { %v314_v24 = vadd.f32 %v298_v41, %v233_v33  ;;  %556 = vpow2.f32 %v144_v29  ;;  %v479_v23 = vadd.f32 -0.5, %v313_v42  ;;  %v148_v39 = vmul.f32 1.442695, %v931_v43 }
  0x6f   :  { %503 = vmatpush3.bf16.xpose.msra.mxu0 %v202_v14  ;;  %v343_v6 = vadd.f32 %v478_v22, %v342_v47  ;;  %558 = vpow2.f32 %v146_v48  ;;  %v299_v37 = vmul.f32 50.0, %v282_v53  ;;  %v150_v54 = vmul.f32 1.442695, %v936_v17  ;;  %v165_v53 = vld [vmem:[#allocation10 + $0x68] sm:$0xff] }
  0x70   :  { %504 = vmatprep.subr.bf16.mxu0 %v714_v0  ;;  %v234_v55 = vsub.f32 -2.3025851, %v874_v51  ;;  %v203_v56 = vpack.c.bf16 %v191_v46, %v190_v44  ;;  %v176_v38 = vmul.f32 %v897_v57, %v160_v49  ;;  %v177_v58 = vmul.f32 %v904_v61, %v161_v5  ;;  %v163_v57 = vld [vmem:[#allocation10 + $0x58] sm:$0xff]  ;;  %v954_v61 = vld [vmem:[#allocation7 + $0x68] sm:$0xff] }
  0x71   :  { %560 = vpow2.f32 %v148_v39  ;;  %v267_v59 = vmul.f32 %v99_v25, %v99_v25  ;;  %v480_v60 = vadd.f32 -0.5, %v314_v24  ;;  %v344_v2 = vadd.f32 %v479_v23, %v343_v6  ;;  %v220_v24 = vld [vmem:[%s1020_s6] sm:$0x1]  ;;  %s716_s6 = smov [#allocation13]  }
  0x72   :  { %562 = vpow2.f32 %v150_v54  ;;  %v315_v1 = vadd.f32 %v299_v37, %v234_v55  ;;  %v218_v3 = vmul.f32 1.442695, %v943_v27  ;;  %v192_v51 = vadd.f32 %v176_v38, %v889_v50  ;;  %s456_s11 = sshll.u32 %s716_s6, 4  ;;  %s457_s11 = int_to_ptr.vmem [resolvable:$true] %s456_s11 }
  0x73   :  { %v193_v31 = vadd.f32 %v177_v58, %v891_v52  ;;  %v178_v35 = vmul.f32 %v911_v30, %v162_v62  ;;  %v268_v7 = vmul.f32 %v949_v63, %v949_v63  ;;  %v235_v45 = vsub.f32 -2.3025851, %v909_v4  ;;  %s654_s14 = scalar_lea.vmem %s457_s11, 128  ;;  %p659_p5 = scmp.lt.s32.totalorder %s457_s11, %s457_s11 }
  0x74   :  { %v555_v9 = vpop.eup %554  ;;  %564 = vpow2.f32 %v218_v3  ;;  %v481_v50 = vadd.f32 -0.5, %v315_v1  ;;  %v345_v8 = vadd.f32 %v480_v60, %v344_v2  ;;  %v269_v12 = vmul.f32 %v954_v61, %v954_v61  ;;  %p655_p4 = scmp.ne.s32.totalorder %s457_s11, %s654_s14  ;;  %p660_p6 = scmp.lt.s32.totalorder %s654_s14, %s654_s14 }
  0x75   :  { %v251_v33 = vmul.f32 %v555_v9, %v555_v9  ;;  %v179_v11 = vmul.f32 %v555_v9, %v163_v57  ;;  %v204_v30 = vpack.c.bf16 %v193_v31, %v192_v51  ;;  %v194_v20 = vadd.f32 %v178_v35, %v920_v26  ;;  %v216_v26 = vld [vmem:[%s1018_s4] sm:$0x1] }
  0x76   :  { %v236_v32 = vsub.f32 -2.3025851, %v922_v40  ;;  %v270_v4 = vmul.f32 %v960_v36, %v960_v36  ;;  %v271_v22 = vmul.f32 %v965_v13, %v965_v13  ;;  %v346_v42 = vadd.f32 %v481_v50, %v345_v8  ;;  %v164_v40 = vld [vmem:[#allocation10 + $0x60] sm:$0xff]  ;;  %p661_p7 = por %p660_p6, %p659_p5 }
  0x77   :  { %505 = vmatpush3.bf16.xpose.msra.mxu0 %v203_v56  ;;  %v283_v10 = vadd.f32 %v267_v59, %v251_v33  ;;  %v195_v29 = vadd.f32 %v179_v11, %v99_v25  ;;  %v237_v44 = vsub.f32 -2.3025851, %v926_v21  ;;  %v238_v21 = vsub.f32 -2.3025851, %v931_v43  ;;  %v167_v11 = vld [vmem:[#allocation10 + $0x78] sm:$0xff] }
  0x78   :  { %506 = vmatprep.subr.bf16.mxu0 %v714_v0  ;;  %v557_v52 = vpop.eup %556  ;;  %v239_v6 = vsub.f32 -2.3025851, %v936_v17  ;;  %v363_v55 = vmul.f32 %v216_v26, %v216_v26  ;;  %v361_v35 = vsub.f32 -2.3025851, %v943_v27  ;;  %p662_p8 = pnand %p661_p7, %p655_p4 }
  0x79   :  { %v559_v14 = vpop.eup %558  ;;  %v300_v15 = vmul.f32 50.0, %v283_v10  ;;  %v252_v18 = vmul.f32 %v557_v52, %v557_v52  ;;  %v205_v38 = vpack.c.bf16 %v195_v29, %v194_v20  ;;  %v180_v58 = vmul.f32 %v557_v52, %v164_v40  ;;  %v166_v52 = vld [vmem:[#allocation10 + $0x70] sm:$0xff] }
  0x7a   :  { %v253_v28 = vmul.f32 %v559_v14, %v559_v14  ;;  %v181_v62 = vmul.f32 %v559_v14, %v165_v53 }
  0x7b   :  { %v561_v16 = vpop.eup %560  ;;  %v284_v19 = vadd.f32 %v268_v7, %v252_v18  ;;  %v316_v41 = vadd.f32 %v300_v15, %v235_v45  ;;  %v196_v10 = vadd.f32 %v180_v58, %v949_v63 }
  0x7c   :  { %v563_v34 = vpop.eup %562  ;;  %v254_v46 = vmul.f32 %v561_v16, %v561_v16  ;;  %v285_v47 = vadd.f32 %v269_v12, %v253_v28  ;;  %v197_v45 = vadd.f32 %v181_v62, %v954_v61  ;;  %v182_v27 = vmul.f32 %v561_v16, %v166_v52 }
  0x7d   :  { %v255_v48 = vmul.f32 %v563_v34, %v563_v34  ;;  %v301_v49 = vmul.f32 50.0, %v284_v19  ;;  %v482_v5 = vadd.f32 -0.5, %v316_v41  ;;  %v183_v20 = vmul.f32 %v563_v34, %v167_v11  ;;  %v382_v19 = vld [vmem:[#allocation4] sm:$0xff] }
  0x7e   :  { %v286_v23 = vadd.f32 %v270_v4, %v254_v46  ;;  %v302_v25 = vmul.f32 50.0, %v285_v47  ;;  %v565_v56 = vpop.eup %564  ;;  %v206_v15 = vpack.c.bf16 %v197_v45, %v196_v10  ;;  %v198_v61 = vadd.f32 %v182_v27, %v960_v36 }
  0x7f   :  { %507 = vmatpush3.bf16.xpose.msra.mxu0 %v204_v30  ;;  %v287_v39 = vadd.f32 %v271_v22, %v255_v48  ;;  %v317_v37 = vadd.f32 %v301_v49, %v236_v32  ;;  %v347_v54 = vadd.f32 %v482_v5, %v346_v42  ;;  %v221_v3 = vmul.f32 %v565_v56, %v220_v24 }
  0x80   :  { %508 = vmatprep.subr.bf16.mxu0 %v714_v0  ;;  %v303_v59 = vmul.f32 50.0, %v286_v23  ;;  %v318_v60 = vadd.f32 %v302_v25, %v237_v44  ;;  %v362_v43 = vmul.f32 %v565_v56, %v565_v56  ;;  %v199_v28 = vadd.f32 %v183_v20, %v965_v13 }
  0x81   :  { %v304_v1 = vmul.f32 50.0, %v287_v39  ;;  %v483_v2 = vadd.f32 -0.5, %v317_v37  ;;  %v222_v57 = vadd.f32 %v221_v3, %v216_v26  ;;  %v383_v22 = vpack.c.bf16 %v382_v19, %v382_v19 }
  0x82   :  { %v319_v9 = vadd.f32 %v303_v59, %v238_v21  ;;  %v484_v51 = vadd.f32 -0.5, %v318_v60  ;;  %v364_v7 = vadd.f32 %v363_v55, %v362_v43  ;;  %v207_v4 = vpack.c.bf16 %v199_v28, %v198_v61 }
  0x83   :  { %v320_v31 = vadd.f32 %v304_v1, %v239_v6  ;;  %v348_v17 = vadd.f32 %v483_v2, %v347_v54  ;;  %223 = vst [vmem:[#allocation3] sm:$0x1] %v222_v57 }
  0x84   :  { %v485_v33 = vadd.f32 -0.5, %v319_v9  ;;  %v365_v12 = vmul.f32 50.0, %v364_v7 }
  0x85   :  { %v486_v50 = vadd.f32 -0.5, %v320_v31  ;;  %v349_v8 = vadd.f32 %v484_v51, %v348_v17 }
  0x86   :  { %v366_v30 = vadd.f32 %v365_v12, %v361_v35 }
  0x87   :  { %509 = vmatpush3.bf16.xpose.msra.mxu0 %v205_v38  ;;  %v350_v14 = vadd.f32 %v485_v33, %v349_v8 }
  0x88   :  { %510 = vmatprep.subr.bf16.mxu0 %v714_v0  ;;  %v487_v32 = vadd.f32 -0.5, %v366_v30 }
  0x89   :  { %v351_v18 = vadd.f32 %v486_v50, %v350_v14 }
  0x8a   :  { %v369_v63 = vsel %vm368_vm1, %v487_v32, 0.0 }
  0x8b   :  { %352 = vadd.xlane.f32.xlu0 %v351_v18 }
  0x8f   :  { %511 = vmatpush3.bf16.xpose.msra.mxu0 %v206_v15  ;;  %370 = vadd.xlane.f32.xlu0 %v369_v63 }
  0x90   :  { %512 = vmatprep.subr.bf16.mxu0 %v714_v0 }
  0x97   :  { %513 = vmatpush3.bf16.xpose.msra.mxu0 %v207_v4 }
  0x9e   :  { %515 = vmatmul.mubr.bf16.vlgmr.msra.gmra.mrb[0].mxu0 %v383_v22 }
 0x118   :  { %v353_v41 = vpop.xlane.xlu0 %352 }
 0x119   :  { %v354_v42 = vrot.slane %v353_v41, 4 }
 0x11b   :  { %v355_v16 = vadd.f32 %v354_v42, %v353_v41 }
 0x11c   :  { %v371_v34 = vpop.xlane.xlu0 %370 }
 0x11d   :  { %v356_v29 = vrot.slane %v355_v16, 2  ;;  %v372_v44 = vrot.slane %v371_v34, 4 }
 0x11f   :  { %v373_v46 = vadd.f32 %v372_v44, %v371_v34  ;;  %v357_v47 = vadd.f32 %v356_v29, %v355_v16 }
 0x121   :  { %v374_v26 = vrot.slane %v373_v46, 2  ;;  %v358_v36 = vrot.slane %v357_v47, 1 }
 0x123   :  { %v375_v40 = vadd.f32 %v374_v26, %v373_v46  ;;  %v359_v13 = vadd.f32 %v358_v36, %v357_v47 }
 0x125   :  { %518 = vpush %v359_v13  ;;  %v376_v0 = vrot.slane %v375_v40, 1 }
 0x127   :  { %v377_v48 = vadd.f32 %v376_v0, %v375_v40 }
 0x129   :  { %520 = vpush %v377_v48 }
 0x156   :  { %s519_s4 = spop %518 }
 0x15a   :  { %s521_s12 = spop %520 }
 0x15b   :  { %s379_s13 = sadd.f32 %s521_s12, %s519_s4 }
 0x15d   :  { %v380_v49 = vstv %s379_s13 }
 0x15e   :  { %381 = vst [vmem:[#allocation13] sm:$0xff] %v380_v49 }
 0x15f   :  { %665 = shalt.err (!%p662_p8)
}
 0x160   :  { %s666_s19 = scalar_lea.hbm %s1022_s8, 128 }
 0x161   :  { %p667_p9 = scmp.ne.s32.totalorder %s1022_s8, %s666_s19  ;;  %p670_p10 = scmp.lt.u32.totalorder %s666_s19, %s1022_s8 }
 0x163   :  { %p672_p11 = pnand %p670_p10, %p667_p9 }
 0x165   :  { %675 = shalt.err (!%p672_p11)
}
 0x166   :  { %459 = dma.vmem_to_hbm [thread:$0]  %s457_s11, 128, %s1022_s8, [#allocation14]   ;;  %v488_v5 = vld [vmem:[#allocation3] ss:$0 sm:$0xff] }
 0x167   :  { %s717_s26 = smov [#allocation12]  }
 0x168   :  { %s446_s27 = sshll.u32 %s717_s26, 4  ;;  %s447_s27 = int_to_ptr.vmem [resolvable:$true] %s446_s27 }
 0x169   :  { %s676_s29 = scalar_lea.vmem %s447_s27, 128  ;;  %p681_p13 = scmp.lt.s32.totalorder %s447_s27, %s447_s27 }
 0x16a   :  { %p677_p12 = scmp.ne.s32.totalorder %s447_s27, %s676_s29  ;;  %p682_p0 = scmp.lt.s32.totalorder %s676_s29, %s676_s29 }
 0x16c   :  { %p683_p1 = por %p682_p0, %p681_p13 }
 0x16e   :  { %p684_p2 = pnand %p683_p1, %p677_p12 }
 0x171   :  { %v433_v24 = vpop.f32.mrb[0].mxu0 }
 0x172   :  { %v434_v53 = vadd.f32 %v488_v5, %v433_v24  ;;  %v516_v21 = vpop.f32.mrb[1].mxu0 }
 0x173   :  { %v436_v6 = vpop.f32.mrb[2].mxu0 }
 0x174   :  { %439 = vst [vmem:[#allocation12] sm:$0xff] %v434_v53  ;;  %v517_v23 = vpop.f32.mrb[3].mxu0 }
 0x175   :  { %687 = shalt.err (!%p684_p2)
}
 0x176   :  { %s688_s8 = scalar_lea.hbm %s1021_s7, 128 }
 0x177   :  { %p689_p3 = scmp.ne.s32.totalorder %s1021_s7, %s688_s8  ;;  %p692_p4 = scmp.lt.u32.totalorder %s688_s8, %s1021_s7 }
 0x179   :  { %p694_p5 = pnand %p692_p4, %p689_p3 }
 0x17b   :  { %697 = shalt.err (!%p694_p5)
}
 0x17c   :  { %449 = dma.vmem_to_hbm [thread:$0]  %s447_s27, 128, %s1021_s7, [#allocation6]  }
 0x17d   :  { %704 = dma.done.wait [#allocation6], 128  }
 0x17e   :  { %705 = vsyncadd [#allocation6], 4294967168 }
 0x17f   :  { %706 = dma.done.wait [#allocation14], 128  }
 0x180   :  { %707 = vsyncadd [#allocation14], 4294967168 }
 0x181   :  { %466 = vsyncpa [#allocation5], 1 }
 0x182   :  { %467 = vsyncpa [#allocation8], 1 }
 0x183   :  { %468 = vsyncpa [#allocation11], 1 }
 0x184   :  { %469 = vsyncpa [#allocation6], 1 }
 0x185   :  { %470 = vsyncpa [#allocation14], 1 }

</bundles_post_ra>
